<compile_context>
chip_gen: v7x
topology: tpu7x:2x2x1
jax: 0.10.0
libtpu: 0.0.40
codegen_flags: <defaults>
</compile_context>

<pallas_src>
import functools

import jax
import jax.numpy as jnp
import numpy as np
from jax.experimental import pallas as pl
from jax.experimental.pallas import tpu as pltpu


# ---------------------------------------------------------------------------
# Channel-shuffle permutation (output channel j reads input channel perm[j]).
#   out.view(N, C/g, g, HW)[n, c, gi] = x.view(N, g, C/g, HW)[n, gi, c]
#   => flat output channel j = c*g + gi  reads  input channel gi*(C/g) + c
# ---------------------------------------------------------------------------
def shuffle_perm(channels, groups):
    cg = channels // groups
    j = np.arange(channels)
    return (j % groups) * cg + (j // groups)


# ---------------------------------------------------------------------------
# Pallas kernel: single grid step per batch tile; the shuffle is a static,
# fully unrolled set of channel copies (pure data movement on sublanes, the
# lane axis H*W is copied densely and never permuted).
# ---------------------------------------------------------------------------
def shuffle_kernel(x_ref, o_ref, *, perm):
    # perm is a static Python tuple -> unrolls to C strided VMEM copies.
    # TODO(synk): for very large C, switch to a grid axis over channels with a
    # scalar-prefetched permutation table instead of unrolling C statements.
    for j, src in enumerate(perm):
        o_ref[:, j, :] = x_ref[:, src, :]


def shuffle_block(x, groups, *, tn=None):
    """Channel shuffle of an NCHW tensor, matching ShuffleBlock.forward."""
    N, C, H, W = x.shape
    assert C % groups == 0, "channels must be divisible by groups"
    HW = H * W
    if tn is None:
        tn = min(N, 256)          # single grid step at toy sizes; tiles when N is big

    x2 = x.reshape(N, C, HW)      # lane-dense last dim (spatial), channels on sublanes
    perm = tuple(int(p) for p in shuffle_perm(C, groups))
    kernel = functools.partial(shuffle_kernel, perm=perm)

    out = pl.pallas_call(
        kernel,
        out_shape=jax.ShapeDtypeStruct((N, C, HW), x.dtype),
        grid_spec=pl.GridSpec(
            grid=(pl.cdiv(N, tn),),
            in_specs=[pl.BlockSpec((tn, C, HW), lambda i: (i, 0, 0))],
            out_specs=pl.BlockSpec((tn, C, HW), lambda i: (i, 0, 0)),
        ),
        compiler_params=pltpu.CompilerParams(
            dimension_semantics=("parallel",)),
        cost_estimate=pl.CostEstimate(
            flops=0,
            transcendentals=0,
            bytes_accessed=int(2 * x.size * x.dtype.itemsize)),
    )(x2)
    return out.reshape(N, C, H, W)


# ---------------------------------------------------------------------------
# Pure-JAX reference following the PyTorch module literally.
# ---------------------------------------------------------------------------
def reference(x, groups):
    N, C, H, W = x.shape
    cg = C // groups
    return (x.reshape(N, groups, cg, H, W)
             .transpose(0, 2, 1, 3, 4)
             .reshape(N, C, H, W))


if __name__ == "__main__":
    N, C, H, W = 2, 8, 16, 16
    groups = 4

    key = jax.random.PRNGKey(0)
    x = jax.random.normal(key, (N, C, H, W), jnp.float32)

    out = shuffle_block(x, groups)
    out = jax.block_until_ready(out)

    ref = reference(x, groups)
    np.testing.assert_allclose(np.asarray(out), np.asarray(ref), rtol=0, atol=0)
    print("KERNEL_OK")
</pallas_src>

<mosaic_0001>
module attributes {stable_mosaic.version = 11 : i64} {
  func.func @shuffle_kernel(%arg0: i32, %arg1: memref<2x8x256xf32, #tpu.memory_space<vmem>>, %arg2: memref<2x8x256xf32, #tpu.memory_space<vmem>>) attributes {dimension_semantics = [#tpu.dimension_semantics<parallel>], iteration_bounds = array<i64: 1>, scalar_prefetch = 0 : i64, scratch_operands = 0 : i64, tpu.core_type = #tpu.core_type<tc>, window_params = [{transform_indices = @transform_0, window_bounds = array<i64: 2, 8, 256>}, {transform_indices = @transform_1, window_bounds = array<i64: 2, 8, 256>}]} {
    %c0 = arith.constant 0 : index
    %c0_0 = arith.constant 0 : index
    %c0_1 = arith.constant 0 : index
    %0 = vector.load %arg1[%c0, %c0_0, %c0_1] : memref<2x8x256xf32, #tpu.memory_space<vmem>>, vector<2x1x256xf32>
    %1 = vector.shape_cast %0 : vector<2x1x256xf32> to vector<2x256xf32>
    %c0_2 = arith.constant 0 : index
    %c0_3 = arith.constant 0 : index
    %c0_4 = arith.constant 0 : index
    %2 = vector.load %arg2[%c0_2, %c0_3, %c0_4] : memref<2x8x256xf32, #tpu.memory_space<vmem>>, vector<2x1x256xf32>
    %3 = vector.shape_cast %2 : vector<2x1x256xf32> to vector<2x256xf32>
    %4 = vector.shape_cast %1 : vector<2x256xf32> to vector<2x1x256xf32>
    tpu.vector_store %arg2[%c0_2, %c0_3, %c0_4], %4 {strides = array<i32>} : memref<2x8x256xf32, #tpu.memory_space<vmem>>, vector<2x1x256xf32>,
    %c0_5 = arith.constant 0 : index
    %c2 = arith.constant 2 : index
    %c0_6 = arith.constant 0 : index
    %5 = vector.load %arg1[%c0_5, %c2, %c0_6] : memref<2x8x256xf32, #tpu.memory_space<vmem>>, vector<2x1x256xf32>
    %6 = vector.shape_cast %5 : vector<2x1x256xf32> to vector<2x256xf32>
    %c0_7 = arith.constant 0 : index
    %c1 = arith.constant 1 : index
    %c0_8 = arith.constant 0 : index
    %7 = vector.load %arg2[%c0_7, %c1, %c0_8] : memref<2x8x256xf32, #tpu.memory_space<vmem>>, vector<2x1x256xf32>
    %8 = vector.shape_cast %7 : vector<2x1x256xf32> to vector<2x256xf32>
    %9 = vector.shape_cast %6 : vector<2x256xf32> to vector<2x1x256xf32>
    tpu.vector_store %arg2[%c0_7, %c1, %c0_8], %9 {strides = array<i32>} : memref<2x8x256xf32, #tpu.memory_space<vmem>>, vector<2x1x256xf32>,
    %c0_9 = arith.constant 0 : index
    %c4 = arith.constant 4 : index
    %c0_10 = arith.constant 0 : index
    %10 = vector.load %arg1[%c0_9, %c4, %c0_10] : memref<2x8x256xf32, #tpu.memory_space<vmem>>, vector<2x1x256xf32>
    %11 = vector.shape_cast %10 : vector<2x1x256xf32> to vector<2x256xf32>
    %c0_11 = arith.constant 0 : index
    %c2_12 = arith.constant 2 : index
    %c0_13 = arith.constant 0 : index
    %12 = vector.load %arg2[%c0_11, %c2_12, %c0_13] : memref<2x8x256xf32, #tpu.memory_space<vmem>>, vector<2x1x256xf32>
    %13 = vector.shape_cast %12 : vector<2x1x256xf32> to vector<2x256xf32>
    %14 = vector.shape_cast %11 : vector<2x256xf32> to vector<2x1x256xf32>
    tpu.vector_store %arg2[%c0_11, %c2_12, %c0_13], %14 {strides = array<i32>} : memref<2x8x256xf32, #tpu.memory_space<vmem>>, vector<2x1x256xf32>,
    %c0_14 = arith.constant 0 : index
    %c6 = arith.constant 6 : index
    %c0_15 = arith.constant 0 : index
    %15 = vector.load %arg1[%c0_14, %c6, %c0_15] : memref<2x8x256xf32, #tpu.memory_space<vmem>>, vector<2x1x256xf32>
    %16 = vector.shape_cast %15 : vector<2x1x256xf32> to vector<2x256xf32>
    %c0_16 = arith.constant 0 : index
    %c3 = arith.constant 3 : index
    %c0_17 = arith.constant 0 : index
    %17 = vector.load %arg2[%c0_16, %c3, %c0_17] : memref<2x8x256xf32, #tpu.memory_space<vmem>>, vector<2x1x256xf32>
    %18 = vector.shape_cast %17 : vector<2x1x256xf32> to vector<2x256xf32>
    %19 = vector.shape_cast %16 : vector<2x256xf32> to vector<2x1x256xf32>
    tpu.vector_store %arg2[%c0_16, %c3, %c0_17], %19 {strides = array<i32>} : memref<2x8x256xf32, #tpu.memory_space<vmem>>, vector<2x1x256xf32>,
    %c0_18 = arith.constant 0 : index
    %c1_19 = arith.constant 1 : index
    %c0_20 = arith.constant 0 : index
    %20 = vector.load %arg1[%c0_18, %c1_19, %c0_20] : memref<2x8x256xf32, #tpu.memory_space<vmem>>, vector<2x1x256xf32>
    %21 = vector.shape_cast %20 : vector<2x1x256xf32> to vector<2x256xf32>
    %c0_21 = arith.constant 0 : index
    %c4_22 = arith.constant 4 : index
    %c0_23 = arith.constant 0 : index
    %22 = vector.load %arg2[%c0_21, %c4_22, %c0_23] : memref<2x8x256xf32, #tpu.memory_space<vmem>>, vector<2x1x256xf32>
    %23 = vector.shape_cast %22 : vector<2x1x256xf32> to vector<2x256xf32>
    %24 = vector.shape_cast %21 : vector<2x256xf32> to vector<2x1x256xf32>
    tpu.vector_store %arg2[%c0_21, %c4_22, %c0_23], %24 {strides = array<i32>} : memref<2x8x256xf32, #tpu.memory_space<vmem>>, vector<2x1x256xf32>,
    %c0_24 = arith.constant 0 : index
    %c3_25 = arith.constant 3 : index
    %c0_26 = arith.constant 0 : index
    %25 = vector.load %arg1[%c0_24, %c3_25, %c0_26] : memref<2x8x256xf32, #tpu.memory_space<vmem>>, vector<2x1x256xf32>
    %26 = vector.shape_cast %25 : vector<2x1x256xf32> to vector<2x256xf32>
    %c0_27 = arith.constant 0 : index
    %c5 = arith.constant 5 : index
    %c0_28 = arith.constant 0 : index
    %27 = vector.load %arg2[%c0_27, %c5, %c0_28] : memref<2x8x256xf32, #tpu.memory_space<vmem>>, vector<2x1x256xf32>
    %28 = vector.shape_cast %27 : vector<2x1x256xf32> to vector<2x256xf32>
    %29 = vector.shape_cast %26 : vector<2x256xf32> to vector<2x1x256xf32>
    tpu.vector_store %arg2[%c0_27, %c5, %c0_28], %29 {strides = array<i32>} : memref<2x8x256xf32, #tpu.memory_space<vmem>>, vector<2x1x256xf32>,
    %c0_29 = arith.constant 0 : index
    %c5_30 = arith.constant 5 : index
    %c0_31 = arith.constant 0 : index
    %30 = vector.load %arg1[%c0_29, %c5_30, %c0_31] : memref<2x8x256xf32, #tpu.memory_space<vmem>>, vector<2x1x256xf32>
    %31 = vector.shape_cast %30 : vector<2x1x256xf32> to vector<2x256xf32>
    %c0_32 = arith.constant 0 : index
    %c6_33 = arith.constant 6 : index
    %c0_34 = arith.constant 0 : index
    %32 = vector.load %arg2[%c0_32, %c6_33, %c0_34] : memref<2x8x256xf32, #tpu.memory_space<vmem>>, vector<2x1x256xf32>
    %33 = vector.shape_cast %32 : vector<2x1x256xf32> to vector<2x256xf32>
    %34 = vector.shape_cast %31 : vector<2x256xf32> to vector<2x1x256xf32>
    tpu.vector_store %arg2[%c0_32, %c6_33, %c0_34], %34 {strides = array<i32>} : memref<2x8x256xf32, #tpu.memory_space<vmem>>, vector<2x1x256xf32>,
    %c0_35 = arith.constant 0 : index
    %c7 = arith.constant 7 : index
    %c0_36 = arith.constant 0 : index
    %35 = vector.load %arg1[%c0_35, %c7, %c0_36] : memref<2x8x256xf32, #tpu.memory_space<vmem>>, vector<2x1x256xf32>
    %36 = vector.shape_cast %35 : vector<2x1x256xf32> to vector<2x256xf32>
    %c0_37 = arith.constant 0 : index
    %c7_38 = arith.constant 7 : index
    %c0_39 = arith.constant 0 : index
    %37 = vector.load %arg2[%c0_37, %c7_38, %c0_39] : memref<2x8x256xf32, #tpu.memory_space<vmem>>, vector<2x1x256xf32>
    %38 = vector.shape_cast %37 : vector<2x1x256xf32> to vector<2x256xf32>
    %39 = vector.shape_cast %36 : vector<2x256xf32> to vector<2x1x256xf32>
    tpu.vector_store %arg2[%c0_37, %c7_38, %c0_39], %39 {strides = array<i32>} : memref<2x8x256xf32, #tpu.memory_space<vmem>>, vector<2x1x256xf32>,
    return
  }
  func.func @transform_0(%arg0: i32) -> (i32, i32, i32) {
    %c0_i32 = arith.constant 0 : i32
    %c0_i32_0 = arith.constant 0 : i32
    %c0_i32_1 = arith.constant 0 : i32
    return %arg0, %c0_i32, %c0_i32_0 : i32, i32, i32
  }
  func.func @transform_1(%arg0: i32) -> (i32, i32, i32) {
    %c0_i32 = arith.constant 0 : i32
    %c0_i32_0 = arith.constant 0 : i32
    %c0_i32_1 = arith.constant 0 : i32
    return %arg0, %c0_i32, %c0_i32_0 : i32, i32, i32
  }
}

</mosaic_0001>

<bundles_post_ra>
// kernel: tpu_custom_call.1
= control target key start
LH: loop header
LB: loop body
LE: loop exit
PB: predicated region body
PF: predicated region fallthrough
CT: control target
= control target key end

     0   :  { %6 = vsyncpa [#allocation3], 0  ;;  %s254_s0 = inlined_call_operand.hbm [shape: f32[2,8,256], index: 0, kind: input, shape index: {}]   ;;  %s255_s1 = inlined_call_operand.hbm [shape: f32[2,8,256], index: 1, kind: output, shape index: {}]  }
   0x1   :  { %7 = vsyncpa [#allocation4], 0  ;;  %s174_s6 = smov [#allocation2]   ;;  %s126_s10 = scalar_lea.hbm %s254_s0, 512 }
   0x2   :  { %s13_s7 = sshll.u32 %s174_s6, 4  ;;  %p127_p0 = scmp.ne.s32.totalorder %s254_s0, %s126_s10  ;;  %s14_s7 = int_to_ptr.vmem [resolvable:$true] %s13_s7 }
   0x3   :  { %p130_p1 = scmp.lt.u32.totalorder %s126_s10, %s254_s0 }
   0x5   :  { %p132_p2 = pnand %p130_p1, %p127_p0 }
   0x7   :  { %135 = shalt.err (!%p132_p2)
}
   0x8   :  { %s136_s15 = scalar_lea.vmem %s14_s7, 512  ;;  %p141_p4 = scmp.lt.s32.totalorder %s14_s7, %s14_s7 }
   0x9   :  { %p137_p3 = scmp.ne.s32.totalorder %s14_s7, %s136_s15  ;;  %p142_p5 = scmp.lt.s32.totalorder %s136_s15, %s136_s15 }
   0xb   :  { %p143_p6 = por %p142_p5, %p141_p4 }
   0xd   :  { %p144_p7 = pnand %p143_p6, %p137_p3 }
   0xf   :  { %147 = shalt.err (!%p144_p7)
}
  0x10   :  { %s175_s16 = smov 256   ;;  %s176_s17 = smov 16  }
  0x11   :  { %19 = dma.hbm_to_vmem [thread:$0]  %s254_s0, 512, %s14_s7, [#allocation3], %s175_s16, %s175_s16, %s176_s17  }
  0x12   :  { %170 = dma.done.wait [#allocation3], 512  }
  0x13   :  { %171 = vsyncadd [#allocation3], 4294966784  ;;  %v26_v0 = vlaneseq  ;;  %s177_s20 = smov [#allocation5]   ;;  %v23_v2 = vld [vmem:[#allocation2] ss:$8 sm:$0x3] }
  0x14   :  { %s110_s21 = sshll.u32 %s177_s20, 4  ;;  %v25_v3 = vld [vmem:[#allocation2 + $0x10] ss:$8 sm:$0x3]  ;;  %s111_s21 = int_to_ptr.vmem [resolvable:$true] %s110_s21 }
  0x15   :  { %vm203_vm0 = vcmp.lt.s32.totalorder %v26_v0, 256  ;;  %v36_v4 = vld [vmem:[#allocation2 + $0x2] ss:$8 sm:$0x3]  ;;  %s148_s0 = scalar_lea.vmem %s111_s21, 512  ;;  %p153_p9 = scmp.lt.s32.totalorder %s111_s21, %s111_s21 }
  0x16   :  { %30 = vst.msk [vmem:[#allocation5] ss:$8 sm:$0x3] %vm203_vm0, %v23_v2  ;;  %33 = vst.msk [vmem:[#allocation5 + $0x10] ss:$8 sm:$0x3] %vm203_vm0, %v25_v3  ;;  %p149_p8 = scmp.ne.s32.totalorder %s111_s21, %s148_s0  ;;  %p154_p10 = scmp.lt.s32.totalorder %s148_s0, %s148_s0 }
  0x17   :  { %v38_v5 = vld [vmem:[#allocation2 + $0x12] ss:$8 sm:$0x3]  ;;  %40 = vst.msk [vmem:[#allocation5 + $0x1] ss:$8 sm:$0x3] %vm203_vm0, %v36_v4 }
  0x18   :  { %43 = vst.msk [vmem:[#allocation5 + $0x11] ss:$8 sm:$0x3] %vm203_vm0, %v38_v5  ;;  %v46_v6 = vld [vmem:[#allocation2 + $0x4] ss:$8 sm:$0x3]  ;;  %p155_p11 = por %p154_p10, %p153_p9 }
  0x19   :  { %v48_v7 = vld [vmem:[#allocation2 + $0x14] ss:$8 sm:$0x3]  ;;  %50 = vst.msk [vmem:[#allocation5 + $0x2] ss:$8 sm:$0x3] %vm203_vm0, %v46_v6 }
  0x1a   :  { %53 = vst.msk [vmem:[#allocation5 + $0x12] ss:$8 sm:$0x3] %vm203_vm0, %v48_v7  ;;  %v56_v8 = vld [vmem:[#allocation2 + $0x6] ss:$8 sm:$0x3]  ;;  %p156_p12 = pnand %p155_p11, %p149_p8 }
  0x1b   :  { %v58_v9 = vld [vmem:[#allocation2 + $0x16] ss:$8 sm:$0x3]  ;;  %60 = vst.msk [vmem:[#allocation5 + $0x3] ss:$8 sm:$0x3] %vm203_vm0, %v56_v8 }
  0x1c   :  { %63 = vst.msk [vmem:[#allocation5 + $0x13] ss:$8 sm:$0x3] %vm203_vm0, %v58_v9  ;;  %v66_v10 = vld [vmem:[#allocation2 + $0x1] ss:$8 sm:$0x3] }
  0x1d   :  { %v68_v11 = vld [vmem:[#allocation2 + $0x11] ss:$8 sm:$0x3]  ;;  %70 = vst.msk [vmem:[#allocation5 + $0x4] ss:$8 sm:$0x3] %vm203_vm0, %v66_v10 }
  0x1e   :  { %73 = vst.msk [vmem:[#allocation5 + $0x14] ss:$8 sm:$0x3] %vm203_vm0, %v68_v11  ;;  %v76_v12 = vld [vmem:[#allocation2 + $0x3] ss:$8 sm:$0x3] }
  0x1f   :  { %v78_v13 = vld [vmem:[#allocation2 + $0x13] ss:$8 sm:$0x3]  ;;  %80 = vst.msk [vmem:[#allocation5 + $0x5] ss:$8 sm:$0x3] %vm203_vm0, %v76_v12 }
  0x20   :  { %83 = vst.msk [vmem:[#allocation5 + $0x15] ss:$8 sm:$0x3] %vm203_vm0, %v78_v13  ;;  %v86_v14 = vld [vmem:[#allocation2 + $0x5] ss:$8 sm:$0x3] }
  0x21   :  { %v88_v15 = vld [vmem:[#allocation2 + $0x15] ss:$8 sm:$0x3]  ;;  %90 = vst.msk [vmem:[#allocation5 + $0x6] ss:$8 sm:$0x3] %vm203_vm0, %v86_v14 }
  0x22   :  { %93 = vst.msk [vmem:[#allocation5 + $0x16] ss:$8 sm:$0x3] %vm203_vm0, %v88_v15  ;;  %v96_v16 = vld [vmem:[#allocation2 + $0x7] ss:$8 sm:$0x3] }
  0x23   :  { %v98_v17 = vld [vmem:[#allocation2 + $0x17] ss:$8 sm:$0x3]  ;;  %100 = vst.msk [vmem:[#allocation5 + $0x7] ss:$8 sm:$0x3] %vm203_vm0, %v96_v16 }
  0x24   :  { %103 = vst.msk [vmem:[#allocation5 + $0x17] ss:$8 sm:$0x3] %vm203_vm0, %v98_v17 }
  0x25   :  { %159 = shalt.err (!%p156_p12)
}
  0x26   :  { %s160_s24 = scalar_lea.hbm %s255_s1, 512 }
  0x27   :  { %p161_p13 = scmp.ne.s32.totalorder %s255_s1, %s160_s24  ;;  %p164_p0 = scmp.lt.u32.totalorder %s160_s24, %s255_s1 }
  0x29   :  { %p166_p1 = pnand %p164_p0, %p161_p13 }
  0x2b   :  { %169 = shalt.err (!%p166_p1)
}
  0x2c   :  { %116 = dma.vmem_to_hbm [thread:$0]  %s111_s21, 512, %s255_s1, [#allocation4], %s175_s16, %s175_s16, %s176_s17  }
  0x2d   :  { %172 = dma.done.wait [#allocation4], 512  }
  0x2e   :  { %173 = vsyncadd [#allocation4], 4294966784 }
  0x2f   :  { %120 = vsyncpa [#allocation3], 1 }
  0x30   :  { %121 = vsyncpa [#allocation4], 1 }

</bundles_post_ra>
